<compile_context>
chip_gen: v6e
topology: v6e:2x2x1
jax: 0.10.0
libtpu: 0.0.40
codegen_flags: <defaults>
</compile_context>

<pallas_src>
import jax
import jax.numpy as jnp
from jax.experimental import pallas as pl
from jax.experimental.pallas import tpu as pltpu


def _round_up(x, m):
    return ((x + m - 1) // m) * m


def _dqn_mlp_kernel(x_ref, w1_ref, b1_ref, w2_ref, b2_ref, w3_ref, b3_ref, o_ref):
    """Fused 3-layer MLP forward for one batch tile.

    x_ref : (TB, S)          input state tile
    w1_ref: (S, Hp)    b1: (1, Hp)     (Hp = hidden padded to 128-lane multiple)
    w2_ref: (Hp, Hp)   b2: (1, Hp)
    w3_ref: (Hp, Ap)   b3: (1, Ap)     (Ap = n_actions padded to 128-lane multiple)
    o_ref : (TB, Ap)         lane-dense q-value tile
    """
    x = x_ref[...]

    h1 = jnp.dot(x, w1_ref[...], preferred_element_type=jnp.float32) + b1_ref[...]
    h1 = jnp.maximum(h1, 0.0)

    h2 = (
        jnp.dot(h1.astype(w2_ref.dtype), w2_ref[...], preferred_element_type=jnp.float32)
        + b2_ref[...]
    )
    h2 = jnp.maximum(h2, 0.0)

    q = (
        jnp.dot(h2.astype(w3_ref.dtype), w3_ref[...], preferred_element_type=jnp.float32)
        + b3_ref[...]
    )
    o_ref[...] = q.astype(o_ref.dtype)


def dqn_forward(x, params, *, batch_tile=None, compute_dtype=jnp.float32):
    """DQNAgent forward pass with a fused Pallas TPU kernel.

    x: (B, state_dim) float32
    params: dict with w1 (S,H), b1 (H,), w2 (H,H), b2 (H,), w3 (H,A), b3 (A,)
            (weights already stored transposed: (in_features, out_features))
    returns: (B, n_actions) float32 q-values
    """
    B, S = x.shape
    H = params["w1"].shape[1]
    A = params["w3"].shape[1]

    # --- tiling: one big batch tile (<=1024 rows); pad B instead of asserting ---
    if batch_tile is None:
        batch_tile = min(_round_up(B, 8), 1024)
    batch_tile = _round_up(batch_tile, 8)
    B_pad = _round_up(B, batch_tile)
    n_tiles = B_pad // batch_tile

    # --- lane-dense hidden & output dims (multiples of 128) ---
    H_pad = _round_up(max(H, 128), 128)
    A_pad = _round_up(max(A, 128), 128)

    x_p = x.astype(compute_dtype)
    if B_pad != B:
        x_p = jnp.pad(x_p, ((0, B_pad - B), (0, 0)))

    # Zero-pad weights: padded columns/rows are exact (produce/consume zeros).
    w1 = jnp.pad(params["w1"], ((0, 0), (0, H_pad - H))).astype(compute_dtype)
    w2 = jnp.pad(params["w2"], ((0, H_pad - H), (0, H_pad - H))).astype(compute_dtype)
    w3 = jnp.pad(params["w3"], ((0, H_pad - H), (0, A_pad - A))).astype(compute_dtype)

    # Biases stay float32 (added after f32 accumulation), shaped (1, dim), padded.
    b1 = jnp.pad(params["b1"].reshape(1, H), ((0, 0), (0, H_pad - H))).astype(jnp.float32)
    b2 = jnp.pad(params["b2"].reshape(1, H), ((0, 0), (0, H_pad - H))).astype(jnp.float32)
    b3 = jnp.pad(params["b3"].reshape(1, A), ((0, 0), (0, A_pad - A))).astype(jnp.float32)

    itemsize = jnp.dtype(compute_dtype).itemsize
    flops = 2 * B_pad * (S * H_pad + H_pad * H_pad + H_pad * A_pad)
    bytes_accessed = (
        B_pad * S * itemsize                               # x
        + (S * H_pad + H_pad * H_pad + H_pad * A_pad) * itemsize  # weights
        + (2 * H_pad + A_pad) * 4                          # biases
        + B_pad * A_pad * 4                                # output
    )

    kernel = pl.pallas_call(
        _dqn_mlp_kernel,
        out_shape=jax.ShapeDtypeStruct((B_pad, A_pad), jnp.float32),
        grid_spec=pltpu.PrefetchScalarGridSpec(
            num_scalar_prefetch=0,
            grid=(n_tiles,),
            in_specs=[
                pl.BlockSpec((batch_tile, S), lambda i: (i, 0)),   # x tile (streamed)
                # weights/biases: constant block index -> resident in VMEM
                pl.BlockSpec((S, H_pad), lambda i: (0, 0)),        # w1
                pl.BlockSpec((1, H_pad), lambda i: (0, 0)),        # b1
                pl.BlockSpec((H_pad, H_pad), lambda i: (0, 0)),    # w2
                pl.BlockSpec((1, H_pad), lambda i: (0, 0)),        # b2
                pl.BlockSpec((H_pad, A_pad), lambda i: (0, 0)),    # w3
                pl.BlockSpec((1, A_pad), lambda i: (0, 0)),        # b3
            ],
            out_specs=pl.BlockSpec((batch_tile, A_pad), lambda i: (i, 0)),
        ),
        compiler_params=pltpu.CompilerParams(
            dimension_semantics=("parallel",),
            vmem_limit_bytes=32 * 1024 * 1024,  # explicit budget; safe on v7x (64 MiB)
        ),
        cost_estimate=pl.CostEstimate(
            flops=flops, transcendentals=0, bytes_accessed=bytes_accessed
        ),
    )

    q_padded = kernel(x_p, w1, b1, w2, b2, w3, b3)
    # Strip batch padding and the action-dim lane padding (free slices).
    return q_padded[:B, :A]


def init_dqn_params(key, state_dim, n_actions):
    """Deterministic init mimicking PyTorch Linear default U(-1/sqrt(fan_in), +).

    Weights are stored already transposed: (in_features, out_features).
    """
    hidden = 2 * int(state_dim)
    k1, k2, k3, k4, k5, k6 = jax.random.split(key, 6)

    def uni(k, shape, fan_in):
        bound = 1.0 / jnp.sqrt(jnp.float32(fan_in))
        return jax.random.uniform(k, shape, jnp.float32, -bound, bound)

    return {
        "w1": uni(k1, (state_dim, hidden), state_dim),
        "b1": uni(k2, (hidden,), state_dim),
        "w2": uni(k3, (hidden, hidden), hidden),
        "b2": uni(k4, (hidden,), hidden),
        "w3": uni(k5, (hidden, n_actions), hidden),
        "b3": uni(k6, (n_actions,), hidden),
    }


def dqn_forward_ref(x, params):
    """Plain-JAX reference of the same forward pass."""
    h1 = jnp.maximum(x @ params["w1"] + params["b1"], 0.0)
    h2 = jnp.maximum(h1 @ params["w2"] + params["b2"], 0.0)
    return h2 @ params["w3"] + params["b3"]


if __name__ == "__main__":
    # Shapes consistent with DQNAgent: state_shape=(32,), n_actions=8.
    # batch=10 deliberately NOT a multiple of the tile to exercise the pad path.
    state_dim = 32
    n_actions = 8
    batch = 10

    key = jax.random.PRNGKey(0)
    pkey, xkey = jax.random.split(key)

    params = init_dqn_params(pkey, state_dim, n_actions)
    states = jax.random.normal(xkey, (batch, state_dim), dtype=jnp.float32)

    qvalues = dqn_forward(states, params)
    qvalues = jax.block_until_ready(qvalues)

    q_ref = dqn_forward_ref(states, params)
    assert qvalues.shape == (batch, n_actions)
    assert jnp.allclose(qvalues, q_ref, atol=1e-5, rtol=1e-5), "mismatch vs reference"

    # TODO(synk): sample_actions (epsilon-greedy) uses host-side numpy RNG in the
    # PyTorch module and is not part of the nn.Module forward; argmax over the
    # returned q-values can be done in plain JAX.
    print("KERNEL_OK")
</pallas_src>

<mosaic_0001>
module attributes {stable_mosaic.version = 11 : i64} {
  func.func @_dqn_mlp_kernel(%arg0: i32, %arg1: memref<16x32xf32, #tpu.memory_space<vmem>>, %arg2: memref<32x128xf32, #tpu.memory_space<vmem>>, %arg3: memref<1x128xf32, #tpu.memory_space<vmem>>, %arg4: memref<128x128xf32, #tpu.memory_space<vmem>>, %arg5: memref<1x128xf32, #tpu.memory_space<vmem>>, %arg6: memref<128x128xf32, #tpu.memory_space<vmem>>, %arg7: memref<1x128xf32, #tpu.memory_space<vmem>>, %arg8: memref<16x128xf32, #tpu.memory_space<vmem>>) attributes {dimension_semantics = [#tpu.dimension_semantics<parallel>], iteration_bounds = array<i64: 1>, scalar_prefetch = 0 : i64, scratch_operands = 0 : i64, tpu.core_type = #tpu.core_type<tc>, window_params = [{transform_indices = @transform_0, window_bounds = array<i64: 16, 32>}, {pipeline_mode = #tpu.pipeline_mode<synchronous>, transform_indices = @transform_1, window_bounds = array<i64: 32, 128>}, {pipeline_mode = #tpu.pipeline_mode<synchronous>, transform_indices = @transform_2, window_bounds = array<i64: 1, 128>}, {pipeline_mode = #tpu.pipeline_mode<synchronous>, transform_indices = @transform_3, window_bounds = array<i64: 128, 128>}, {pipeline_mode = #tpu.pipeline_mode<synchronous>, transform_indices = @transform_4, window_bounds = array<i64: 1, 128>}, {pipeline_mode = #tpu.pipeline_mode<synchronous>, transform_indices = @transform_5, window_bounds = array<i64: 128, 128>}, {pipeline_mode = #tpu.pipeline_mode<synchronous>, transform_indices = @transform_6, window_bounds = array<i64: 1, 128>}, {transform_indices = @transform_7, window_bounds = array<i64: 16, 128>}]} {
    %c0 = arith.constant 0 : index
    %c0_0 = arith.constant 0 : index
    %0 = vector.load %arg1[%c0, %c0_0] : memref<16x32xf32, #tpu.memory_space<vmem>>, vector<16x32xf32>
    %c0_1 = arith.constant 0 : index
    %c0_2 = arith.constant 0 : index
    %1 = vector.load %arg2[%c0_1, %c0_2] : memref<32x128xf32, #tpu.memory_space<vmem>>, vector<32x128xf32>
    %cst = arith.constant dense<0.000000e+00> : vector<16x128xf32>
    %2 = tpu.matmul %0, %1, %cst {dimension_numbers = #tpu.dot_dimension_numbers<[1], [0], [0], [1], [0, 0, 1, 1], [], []>} : vector<16x32xf32>, vector<32x128xf32>, vector<16x128xf32> -> vector<16x128xf32>
    %c0_3 = arith.constant 0 : index
    %c0_4 = arith.constant 0 : index
    %3 = vector.load %arg3[%c0_3, %c0_4] : memref<1x128xf32, #tpu.memory_space<vmem>>, vector<1x128xf32>
    %4 = vector.broadcast %3 : vector<1x128xf32> to vector<16x128xf32>
    %5 = arith.addf %2, %4 : vector<16x128xf32>
    %cst_5 = arith.constant 0.000000e+00 : f32
    %6 = vector.broadcast %cst_5 : f32 to vector<16x128xf32>
    %7 = arith.maximumf %5, %6 : vector<16x128xf32>
    %c0_6 = arith.constant 0 : index
    %c0_7 = arith.constant 0 : index
    %8 = vector.load %arg4[%c0_6, %c0_7] : memref<128x128xf32, #tpu.memory_space<vmem>>, vector<128x128xf32>
    %cst_8 = arith.constant dense<0.000000e+00> : vector<16x128xf32>
    %9 = tpu.matmul %7, %8, %cst_8 {dimension_numbers = #tpu.dot_dimension_numbers<[1], [0], [0], [1], [0, 0, 1, 1], [], []>} : vector<16x128xf32>, vector<128x128xf32>, vector<16x128xf32> -> vector<16x128xf32>
    %c0_9 = arith.constant 0 : index
    %c0_10 = arith.constant 0 : index
    %10 = vector.load %arg5[%c0_9, %c0_10] : memref<1x128xf32, #tpu.memory_space<vmem>>, vector<1x128xf32>
    %11 = vector.broadcast %10 : vector<1x128xf32> to vector<16x128xf32>
    %12 = arith.addf %9, %11 : vector<16x128xf32>
    %cst_11 = arith.constant 0.000000e+00 : f32
    %13 = vector.broadcast %cst_11 : f32 to vector<16x128xf32>
    %14 = arith.maximumf %12, %13 : vector<16x128xf32>
    %c0_12 = arith.constant 0 : index
    %c0_13 = arith.constant 0 : index
    %15 = vector.load %arg6[%c0_12, %c0_13] : memref<128x128xf32, #tpu.memory_space<vmem>>, vector<128x128xf32>
    %cst_14 = arith.constant dense<0.000000e+00> : vector<16x128xf32>
    %16 = tpu.matmul %14, %15, %cst_14 {dimension_numbers = #tpu.dot_dimension_numbers<[1], [0], [0], [1], [0, 0, 1, 1], [], []>} : vector<16x128xf32>, vector<128x128xf32>, vector<16x128xf32> -> vector<16x128xf32>
    %c0_15 = arith.constant 0 : index
    %c0_16 = arith.constant 0 : index
    %17 = vector.load %arg7[%c0_15, %c0_16] : memref<1x128xf32, #tpu.memory_space<vmem>>, vector<1x128xf32>
    %18 = vector.broadcast %17 : vector<1x128xf32> to vector<16x128xf32>
    %19 = arith.addf %16, %18 : vector<16x128xf32>
    %c0_17 = arith.constant 0 : index
    %c0_18 = arith.constant 0 : index
    %20 = vector.load %arg8[%c0_17, %c0_18] : memref<16x128xf32, #tpu.memory_space<vmem>>, vector<16x128xf32>
    tpu.vector_store %arg8[%c0_17, %c0_18], %19 {strides = array<i32>} : memref<16x128xf32, #tpu.memory_space<vmem>>, vector<16x128xf32>,
    return
  }
  func.func @transform_0(%arg0: i32) -> (i32, i32) {
    %c0_i32 = arith.constant 0 : i32
    %c0_i32_0 = arith.constant 0 : i32
    return %arg0, %c0_i32 : i32, i32
  }
  func.func @transform_1(%arg0: i32) -> (i32, i32) {
    %c0_i32 = arith.constant 0 : i32
    %c0_i32_0 = arith.constant 0 : i32
    %c0_i32_1 = arith.constant 0 : i32
    return %c0_i32, %c0_i32_0 : i32, i32
  }
  func.func @transform_2(%arg0: i32) -> (i32, i32) {
    %c0_i32 = arith.constant 0 : i32
    %c0_i32_0 = arith.constant 0 : i32
    %c0_i32_1 = arith.constant 0 : i32
    return %c0_i32, %c0_i32_0 : i32, i32
  }
  func.func @transform_3(%arg0: i32) -> (i32, i32) {
    %c0_i32 = arith.constant 0 : i32
    %c0_i32_0 = arith.constant 0 : i32
    %c0_i32_1 = arith.constant 0 : i32
    return %c0_i32, %c0_i32_0 : i32, i32
  }
  func.func @transform_4(%arg0: i32) -> (i32, i32) {
    %c0_i32 = arith.constant 0 : i32
    %c0_i32_0 = arith.constant 0 : i32
    %c0_i32_1 = arith.constant 0 : i32
    return %c0_i32, %c0_i32_0 : i32, i32
  }
  func.func @transform_5(%arg0: i32) -> (i32, i32) {
    %c0_i32 = arith.constant 0 : i32
    %c0_i32_0 = arith.constant 0 : i32
    %c0_i32_1 = arith.constant 0 : i32
    return %c0_i32, %c0_i32_0 : i32, i32
  }
  func.func @transform_6(%arg0: i32) -> (i32, i32) {
    %c0_i32 = arith.constant 0 : i32
    %c0_i32_0 = arith.constant 0 : i32
    %c0_i32_1 = arith.constant 0 : i32
    return %c0_i32, %c0_i32_0 : i32, i32
  }
  func.func @transform_7(%arg0: i32) -> (i32, i32) {
    %c0_i32 = arith.constant 0 : i32
    %c0_i32_0 = arith.constant 0 : i32
    return %arg0, %c0_i32 : i32, i32
  }
}

</mosaic_0001>

<bundles_post_ra>
// kernel: tpu_custom_call.1
= control target key start
LH: loop header
LB: loop body
LE: loop exit
PB: predicated region body
PF: predicated region fallthrough
CT: control target
= control target key end

     0   :  { %12 = vsyncpa [#allocation3], 0  ;;  %s729_s0 = inlined_call_operand.hbm [shape: f32[16,32], index: 0, kind: input, shape index: {}]   ;;  %s730_s1 = inlined_call_operand.hbm [shape: f32[32,128], index: 1, kind: input, shape index: {}]   ;;  %s731_s2 = inlined_call_operand.vmem [shape: f32[1,128], index: 2, kind: input, shape index: {}]   ;;  %s732_s3 = inlined_call_operand.hbm [shape: f32[128,128], index: 3, kind: input, shape index: {}]   ;;  %s733_s4 = inlined_call_operand.vmem [shape: f32[1,128], index: 4, kind: input, shape index: {}]   ;;  %s734_s5 = inlined_call_operand.hbm [shape: f32[128,128], index: 5, kind: input, shape index: {}]   ;;  %s735_s6 = inlined_call_operand.vmem [shape: f32[1,128], index: 6, kind: input, shape index: {}]   ;;  %s736_s7 = inlined_call_operand.hbm [shape: f32[16,128], index: 7, kind: output, shape index: {}]  }
   0x1   :  { %13 = vsyncpa [#allocation6], 0 }
   0x2   :  { %14 = vsyncpa [#allocation9], 0 }
   0x3   :  { %15 = vsyncpa [#allocation4], 0  ;;  %s641_s24 = smov [#allocation5]   ;;  %s642_s26 = smov [#allocation2]  }
   0x4   :  { %s33_s25 = sshll.u32 %s641_s24, 4  ;;  %s21_s27 = sshll.u32 %s642_s26, 4  ;;  %s34_s25 = int_to_ptr.vmem [resolvable:$true] %s33_s25  ;;  %s22_s27 = int_to_ptr.vmem [resolvable:$true] %s21_s27 }
   0x5   :  { %s541_s28 = scalar_lea.vmem %s34_s25, 512  ;;  %p546_p1 = scmp.lt.s32.totalorder %s34_s25, %s34_s25 }
   0x6   :  { %p542_p0 = scmp.ne.s32.totalorder %s34_s25, %s541_s28  ;;  %p547_p2 = scmp.lt.s32.totalorder %s541_s28, %s541_s28 }
   0x8   :  { %p548_p3 = por %p547_p2, %p546_p1 }
   0xa   :  { %p549_p4 = pnand %p548_p3, %p542_p0 }
   0xc   :  { %552 = shalt.err (!%p549_p4)
}
   0xd   :  { %s643_s29 = smov 128   ;;  %s644_s30 = smov 8  }
   0xe   :  { %39 = dma.hbm_to_vmem [thread:$0]  %s730_s1, 512, %s34_s25, [#allocation6], %s643_s29, %s643_s29, %s644_s30  }
   0xf   :  { %s561_s10 = scalar_lea.vmem %s22_s27, 256  ;;  %p566_p6 = scmp.lt.s32.totalorder %s22_s27, %s22_s27 }
  0x10   :  { %p562_p5 = scmp.ne.s32.totalorder %s22_s27, %s561_s10  ;;  %p567_p7 = scmp.lt.s32.totalorder %s561_s10, %s561_s10 }
  0x12   :  { %p568_p8 = por %p567_p7, %p566_p6 }
  0x14   :  { %p569_p9 = pnand %p568_p8, %p562_p5 }
  0x16   :  { %572 = shalt.err (!%p569_p9)
}
  0x17   :  { %27 = dma.hbm_to_vmem [thread:$0]  %s729_s0, 256, %s22_s27, [#allocation3], %s643_s29, %s643_s29, %s644_s30  }
  0x18   :  { %s645_s13 = smov [#allocation7]   ;;  %s646_s15 = smov [#allocation8]  }
  0x19   :  { %s47_s14 = sshll.u32 %s645_s13, 4  ;;  %s61_s16 = sshll.u32 %s646_s15, 4  ;;  %s48_s14 = int_to_ptr.vmem [resolvable:$true] %s47_s14  ;;  %s62_s16 = int_to_ptr.vmem [resolvable:$true] %s61_s16 }
  0x1a   :  { %s581_s1 = scalar_lea.vmem %s48_s14, 2048  ;;  %p586_p11 = scmp.lt.s32.totalorder %s48_s14, %s48_s14 }
  0x1b   :  { %p582_p10 = scmp.ne.s32.totalorder %s48_s14, %s581_s1  ;;  %p587_p12 = scmp.lt.s32.totalorder %s581_s1, %s581_s1 }
  0x1d   :  { %p588_p13 = por %p587_p12, %p586_p11 }
  0x1f   :  { %p589_p0 = pnand %p588_p13, %p582_p10 }
  0x21   :  { %592 = shalt.err (!%p589_p0)
}
  0x22   :  { %53 = dma.hbm_to_vmem [thread:$0]  %s732_s3, 2048, %s48_s14, [#allocation6], %s643_s29, %s643_s29, %s644_s30  }
  0x23   :  { %s601_s0 = scalar_lea.vmem %s62_s16, 2048  ;;  %p606_p2 = scmp.lt.s32.totalorder %s62_s16, %s62_s16 }
  0x24   :  { %p602_p1 = scmp.ne.s32.totalorder %s62_s16, %s601_s0  ;;  %p607_p3 = scmp.lt.s32.totalorder %s601_s0, %s601_s0 }
  0x26   :  { %p608_p4 = por %p607_p3, %p606_p2 }
  0x28   :  { %p609_p5 = pnand %p608_p4, %p602_p1 }
  0x2a   :  { %612 = shalt.err (!%p609_p5)
}
  0x2b   :  { %67 = dma.hbm_to_vmem [thread:$0]  %s734_s5, 2048, %s62_s16, [#allocation9], %s643_s29, %s643_s29, %s644_s30  }
  0x2c   :  { %633 = dma.done.wait [#allocation3], 256  }
  0x2d   :  { %634 = vsyncadd [#allocation3], 4294967040 }
  0x2e   :  { %635 = dma.done.wait [#allocation6], 2560  }
  0x2f   :  { %636 = vsyncadd [#allocation6], 4294964736 }
  0x30   :  { %637 = dma.done.wait [#allocation9], 2048  }
  0x31   :  { %638 = vsyncadd [#allocation9], 4294965248  ;;  %vm95_vm0 = vcmask 261120   ;;  %v87_v0 = vld [vmem:[#allocation5 + $0x18] sm:$0xff]  ;;  %v86_v1 = vld [vmem:[#allocation5 + $0x10] sm:$0xff]  ;;  %s647_s24 = smov [#allocation10]  }
  0x32   :  { %445 = vmatprep.subr.mxu0 %v87_v0  ;;  %v82_v2 = vld [vmem:[#allocation2] sm:$0xff]  ;;  %v85_v3 = vld [vmem:[#allocation5 + $0x8] sm:$0xff]  ;;  %v194_v4 = vld [vmem:[#allocation7 + $0x78] sm:$0xff]  ;;  %s384_s25 = sshll.u32 %s647_s24, 4  ;;  %s385_s25 = int_to_ptr.vmem [resolvable:$true] %s384_s25 }
  0x33   :  { %446 = vmatpush3.msra.mxu0 %v87_v0  ;;  %453 = vmatprep.mubr.msk.f32.mxu0 %vm95_vm0, %v82_v2  ;;  %v193_v5 = vld [vmem:[#allocation7 + $0x70] sm:$0xff]  ;;  %v84_v6 = vld [vmem:[#allocation5] sm:$0xff]  ;;  %v192_v7 = vld [vmem:[#allocation7 + $0x68] sm:$0xff]  ;;  %p618_p7 = scmp.lt.s32.totalorder %s385_s25, %s385_s25 }
  0x34   :  { %447 = vmatprep.subr.mxu0 %v86_v1  ;;  %456 = vmatprep.subr.mxu1 %v194_v4  ;;  %v83_v8 = vld [vmem:[#allocation2 + $0x8] sm:$0xff]  ;;  %v191_v9 = vld [vmem:[#allocation7 + $0x60] sm:$0xff]  ;;  %v189_v11 = vld [vmem:[#allocation7 + $0x50] sm:$0xff] }
  0x35   :  { %448 = vmatpush3.msra.mxu0 %v86_v1  ;;  %457 = vmatpush3.msra.mxu1 %v194_v4  ;;  %v190_v10 = vld [vmem:[#allocation7 + $0x58] sm:$0xff]  ;;  %v188_v12 = vld [vmem:[#allocation7 + $0x48] sm:$0xff]  ;;  %v187_v13 = vld [vmem:[#allocation7 + $0x40] sm:$0xff] }
  0x36   :  { %449 = vmatprep.subr.mxu0 %v85_v3  ;;  %458 = vmatprep.subr.mxu1 %v193_v5  ;;  %v186_v14 = vld [vmem:[#allocation7 + $0x38] sm:$0xff]  ;;  %v185_v15 = vld [vmem:[#allocation7 + $0x30] sm:$0xff]  ;;  %v184_v16 = vld [vmem:[#allocation7 + $0x28] sm:$0xff] }
  0x37   :  { %450 = vmatpush3.msra.mxu0 %v85_v3  ;;  %459 = vmatpush3.msra.mxu1 %v193_v5  ;;  %v183_v17 = vld [vmem:[#allocation7 + $0x20] sm:$0xff]  ;;  %v182_v18 = vld [vmem:[#allocation7 + $0x18] sm:$0xff]  ;;  %v181_v19 = vld [vmem:[#allocation7 + $0x10] sm:$0xff] }
  0x38   :  { %451 = vmatprep.subr.mxu0 %v84_v6  ;;  %460 = vmatprep.subr.mxu1 %v192_v7  ;;  %v180_v20 = vld [vmem:[#allocation7 + $0x8] sm:$0xff]  ;;  %v179_v21 = vld [vmem:[#allocation7] sm:$0xff]  ;;  %v294_v22 = vld [vmem:[#allocation8 + $0x78] sm:$0xff] }
  0x39   :  { %452 = vmatpush3.msra.mxu0 %v84_v6  ;;  %461 = vmatpush3.msra.mxu1 %v192_v7  ;;  %v293_v23 = vld [vmem:[#allocation8 + $0x70] sm:$0xff]  ;;  %v292_v24 = vld [vmem:[#allocation8 + $0x68] sm:$0xff]  ;;  %v291_v25 = vld [vmem:[#allocation8 + $0x60] sm:$0xff] }
  0x3a   :  { %454 = vmatmul.mubr.msk.f32.vlgmr.msra.gmra.mxu0 %vm95_vm0, %v83_v8  ;;  %462 = vmatprep.subr.mxu1 %v191_v9  ;;  %v290_v26 = vld [vmem:[#allocation8 + $0x58] sm:$0xff]  ;;  %v289_v27 = vld [vmem:[#allocation8 + $0x50] sm:$0xff]  ;;  %v288_v28 = vld [vmem:[#allocation8 + $0x48] sm:$0xff] }
  0x3b   :  { %463 = vmatpush3.msra.mxu1 %v191_v9  ;;  %491 = vmatprep.subr.mxu0 %v294_v22  ;;  %v287_v29 = vld [vmem:[#allocation8 + $0x40] sm:$0xff]  ;;  %v286_v30 = vld [vmem:[#allocation8 + $0x38] sm:$0xff]  ;;  %v285_v31 = vld [vmem:[#allocation8 + $0x30] sm:$0xff] }
  0x3c   :  { %464 = vmatprep.subr.mxu1 %v190_v10  ;;  %492 = vmatpush3.msra.mxu0 %v294_v22  ;;  %v284_v32 = vld [vmem:[#allocation8 + $0x28] sm:$0xff]  ;;  %v283_v33 = vld [vmem:[#allocation8 + $0x20] sm:$0xff]  ;;  %v398_v34 = vld [vmem:[%s731_s2] ss:$0 sm:$0xff] }
  0x3d   :  { %465 = vmatpush3.msra.mxu1 %v190_v10  ;;  %493 = vmatprep.subr.mxu0 %v293_v23  ;;  %v282_v41 = vld [vmem:[#allocation8 + $0x18] sm:$0xff]  ;;  %v281_v42 = vld [vmem:[#allocation8 + $0x10] sm:$0xff]  ;;  %v280_v43 = vld [vmem:[#allocation8 + $0x8] sm:$0xff] }
  0x3e   :  { %466 = vmatprep.subr.mxu1 %v189_v11  ;;  %494 = vmatpush3.msra.mxu0 %v293_v23  ;;  %v279_v44 = vld [vmem:[#allocation8] sm:$0xff]  ;;  %v401_v45 = vld [vmem:[%s733_s4] ss:$0 sm:$0xff]  ;;  %s613_s4 = scalar_lea.vmem %s385_s25, 256 }
  0x3f   :  { %467 = vmatpush3.msra.mxu1 %v189_v11  ;;  %495 = vmatprep.subr.mxu0 %v292_v24  ;;  %v402_v52 = vld [vmem:[%s735_s6] ss:$0 sm:$0xff]  ;;  %p614_p6 = scmp.ne.s32.totalorder %s385_s25, %s613_s4  ;;  %p619_p8 = scmp.lt.s32.totalorder %s613_s4, %s613_s4 }
  0x40   :  { %468 = vmatprep.subr.mxu1 %v188_v12  ;;  %496 = vmatpush3.msra.mxu0 %v292_v24 }
  0x41   :  { %469 = vmatpush3.msra.mxu1 %v188_v12  ;;  %497 = vmatprep.subr.mxu0 %v291_v25  ;;  %p620_p9 = por %p619_p8, %p618_p7 }
  0x42   :  { %470 = vmatprep.subr.mxu1 %v187_v13  ;;  %498 = vmatpush3.msra.mxu0 %v291_v25 }
  0x43   :  { %471 = vmatpush3.msra.mxu1 %v187_v13  ;;  %499 = vmatprep.subr.mxu0 %v290_v26  ;;  %p621_p10 = pnand %p620_p9, %p614_p6 }
  0x44   :  { %472 = vmatprep.subr.mxu1 %v186_v14  ;;  %500 = vmatpush3.msra.mxu0 %v290_v26 }
  0x45   :  { %473 = vmatpush3.msra.mxu1 %v186_v14  ;;  %501 = vmatprep.subr.mxu0 %v289_v27 }
  0x46   :  { %474 = vmatprep.subr.mxu1 %v185_v15  ;;  %502 = vmatpush3.msra.mxu0 %v289_v27 }
  0x47   :  { %475 = vmatpush3.msra.mxu1 %v185_v15  ;;  %503 = vmatprep.subr.mxu0 %v288_v28 }
  0x48   :  { %476 = vmatprep.subr.mxu1 %v184_v16  ;;  %504 = vmatpush3.msra.mxu0 %v288_v28 }
  0x49   :  { %477 = vmatpush3.msra.mxu1 %v184_v16  ;;  %505 = vmatprep.subr.mxu0 %v287_v29 }
  0x4a   :  { %478 = vmatprep.subr.mxu1 %v183_v17  ;;  %506 = vmatpush3.msra.mxu0 %v287_v29 }
  0x4b   :  { %479 = vmatpush3.msra.mxu1 %v183_v17  ;;  %507 = vmatprep.subr.mxu0 %v286_v30 }
  0x4c   :  { %480 = vmatprep.subr.mxu1 %v182_v18  ;;  %508 = vmatpush3.msra.mxu0 %v286_v30 }
  0x4d   :  { %481 = vmatpush3.msra.mxu1 %v182_v18  ;;  %509 = vmatprep.subr.mxu0 %v285_v31 }
  0x4e   :  { %482 = vmatprep.subr.mxu1 %v181_v19  ;;  %510 = vmatpush3.msra.mxu0 %v285_v31 }
  0x4f   :  { %483 = vmatpush3.msra.mxu1 %v181_v19  ;;  %511 = vmatprep.subr.mxu0 %v284_v32 }
  0x50   :  { %484 = vmatprep.subr.mxu1 %v180_v20  ;;  %512 = vmatpush3.msra.mxu0 %v284_v32 }
  0x51   :  { %485 = vmatpush3.msra.mxu1 %v180_v20  ;;  %513 = vmatprep.subr.mxu0 %v283_v33 }
  0x52   :  { %486 = vmatprep.subr.mxu1 %v179_v21  ;;  %514 = vmatpush3.msra.mxu0 %v283_v33 }
  0x53   :  { %487 = vmatpush3.msra.mxu1 %v179_v21  ;;  %515 = vmatprep.subr.mxu0 %v282_v41 }
  0x54   :  { %516 = vmatpush3.msra.mxu0 %v282_v41 }
  0x55   :  { %517 = vmatprep.subr.mxu0 %v281_v42 }
  0x56   :  { %518 = vmatpush3.msra.mxu0 %v281_v42 }
  0x57   :  { %519 = vmatprep.subr.mxu0 %v280_v43 }
  0x58   :  { %520 = vmatpush3.msra.mxu0 %v280_v43 }
  0x59   :  { %521 = vmatprep.subr.mxu0 %v279_v44 }
  0x5a   :  { %522 = vmatpush3.msra.mxu0 %v279_v44 }
  0xfa   :  { %v455_v35 = vpop.f32.mrf.mxu0 }
  0xfb   :  { %v174_v36 = vadd.f32 %v455_v35, %v398_v34 }
  0xfc   :  { %v168_v37 = vpop.f32.mrf.mxu0 }
  0xfd   :  { %v169_v38 = vadd.f32 %v398_v34, %v168_v37  ;;  %v178_v40 = vmax.f32 %v174_v36, 0.0 }
  0xff   :  { %v177_v39 = vmax.f32 %v169_v38, 0.0 }
 0x101   :  { %488 = vmatprep.mubr.f32.mxu1 %v177_v39 }
 0x102   :  { %489 = vmatmul.mubr.f32.vlgmr.msra.gmra.mxu1 %v178_v40 }
 0x1c2   :  { %v490_v46 = vpop.f32.mrf.mxu1 }
 0x1c3   :  { %v274_v47 = vadd.f32 %v490_v46, %v401_v45 }
 0x1c4   :  { %v268_v48 = vpop.f32.mrf.mxu1 }
 0x1c5   :  { %v269_v49 = vadd.f32 %v401_v45, %v268_v48  ;;  %v278_v51 = vmax.f32 %v274_v47, 0.0 }
 0x1c7   :  { %v277_v50 = vmax.f32 %v269_v49, 0.0 }
 0x1c9   :  { %523 = vmatprep.mubr.f32.mxu0 %v277_v50 }
 0x1ca   :  { %524 = vmatmul.mubr.f32.vlgmr.msra.gmra.mxu0 %v278_v51 }
 0x28a   :  { %v525_v53 = vpop.f32.mrf.mxu0 }
 0x28b   :  { %v374_v54 = vadd.f32 %v525_v53, %v402_v52 }
 0x28c   :  { %v368_v55 = vpop.f32.mrf.mxu0 }
 0x28d   :  { %378 = vst [vmem:[#allocation10 + $0x8] sm:$0xff] %v374_v54  ;;  %v369_v56 = vadd.f32 %v402_v52, %v368_v55 }
 0x28f   :  { %377 = vst [vmem:[#allocation10] sm:$0xff] %v369_v56 }
 0x290   :  { %624 = shalt.err (!%p621_p10)
}
 0x291   :  { %390 = dma.vmem_to_hbm [thread:$0]  %s385_s25, 256, %s736_s7, [#allocation4], %s643_s29, %s643_s29, %s644_s30  }
 0x292   :  { %639 = dma.done.wait [#allocation4], 256  }
 0x293   :  { %640 = vsyncadd [#allocation4], 4294967040 }
 0x294   :  { %394 = vsyncpa [#allocation3], 1 }
 0x295   :  { %395 = vsyncpa [#allocation6], 1 }
 0x296   :  { %396 = vsyncpa [#allocation9], 1 }
 0x297   :  { %397 = vsyncpa [#allocation4], 1 }

</bundles_post_ra>
